<compile_context>
chip_gen: v7x
topology: tpu7x:2x2x1
jax: 0.10.0
libtpu: 0.0.40
codegen_flags: <defaults>
</compile_context>

<pallas_src>
import jax
import jax.numpy as jnp
from jax.experimental import pallas as pl
from jax.experimental.pallas import tpu as pltpu


def _bmm(a, b):
    """Batched matmul (B, M, K) x (B, K, N) -> (B, M, N), f32 accumulation.

    Uses the same dimension-number pattern as `jnp.einsum('bqk,bkd->bqd', ...)`
    (contract last dim of lhs with middle dim of rhs, batch dim 0).
    """
    return jax.lax.dot_general(
        a, b,
        dimension_numbers=(((2,), (1,)), ((0,), (0,))),
        preferred_element_type=jnp.float32)


def cls_attention_kernel(z_ref, x_ref, wz_ref, wkv_ref, hs_ref, he_ref,
                         wp_ref, bp_ref, o_ref):
    # z_ref:  (Bb, 1, C)      cls tokens for this batch block
    # x_ref:  (Bb, Nc, C)     context tokens
    # wz_ref: (C, 3C)         [Wq.T * scale | Wk.T | Wv.T]   (pre-transposed)
    # wkv_ref:(C, 2C)         [Wk.T | Wv.T]
    # hs_ref: (C, H)          head-sum matrix  (1 where channel belongs to head)
    # he_ref: (H, C)          head-expand matrix (= hs.T)
    # wp_ref: (C, C)          proj weight, pre-transposed
    # bp_ref: (1, 1, C)       proj bias
    # o_ref:  (Bb, 1, C)      output cls tokens
    C = z_ref.shape[-1]
    bb = z_ref.shape[0]

    z = z_ref[...]                                    # (Bb, 1, C)
    x = x_ref[...]                                    # (Bb, Nc, C)

    # Shared weights broadcast over the batch block so every contraction is a
    # plain batched matmul (no in-kernel reshapes / transposes needed).
    wz = jnp.broadcast_to(wz_ref[...], (bb, *wz_ref.shape))      # (Bb, C, 3C)
    wkv = jnp.broadcast_to(wkv_ref[...], (bb, *wkv_ref.shape))   # (Bb, C, 2C)
    hs = jnp.broadcast_to(hs_ref[...], (bb, *hs_ref.shape))      # (Bb, C, H)
    he = jnp.broadcast_to(he_ref[...], (bb, *he_ref.shape))      # (Bb, H, C)
    wp = jnp.broadcast_to(wp_ref[...], (bb, *wp_ref.shape))      # (Bb, C, C)

    # cls-token projections: q (scale already folded), k_cls, v_cls fused.
    zqkv = _bmm(z, wz)                                # (Bb, 1, 3C) f32
    q = zqkv[:, :, :C]                                # (Bb, 1, C)
    k_cls = zqkv[:, :, C:2 * C]                       # (Bb, 1, C)
    v_cls = zqkv[:, :, 2 * C:]                        # (Bb, 1, C)

    # Context k/v projection: one fused matmul over the whole block.
    kv = _bmm(x, wkv)                                 # (Bb, Nc, 2C) f32
    k = kv[:, :, :C]                                  # (Bb, Nc, C)
    v = kv[:, :, C:]                                  # (Bb, Nc, C)

    # Per-head logits: s[b, n, h] = <q_h[b], k_h[b, n]>  (scale in Wq).
    s_ctx = _bmm(k * q, hs)                           # (Bb, Nc, H)
    s_cls = _bmm(k_cls * q, hs)                       # (Bb, 1, H)

    # Softmax over the (cls + context) key axis, per (batch, head).
    m = jnp.maximum(jnp.max(s_ctx, axis=1, keepdims=True), s_cls)   # (Bb, 1, H)
    e_ctx = jnp.exp(s_ctx - m)                        # (Bb, Nc, H)
    e_cls = jnp.exp(s_cls - m)                        # (Bb, 1, H)
    denom = jnp.sum(e_ctx, axis=1, keepdims=True) + e_cls           # (Bb, 1, H)
    # approx=True is available (EUP) when the accuracy budget allows; the demo
    # checks against an f32 reference at 1e-4, so keep the exact reciprocal.
    inv = pl.reciprocal(denom, approx=False)          # (Bb, 1, H)
    p_ctx = e_ctx * inv                               # (Bb, Nc, H)
    p_cls = e_cls * inv                               # (Bb, 1, H)

    # Expand per-head weights back to full channel width, weighted-sum values.
    pf_ctx = _bmm(p_ctx, he)                          # (Bb, Nc, C)
    pf_cls = _bmm(p_cls, he)                          # (Bb, 1, C)
    attn = jnp.sum(pf_ctx * v, axis=1, keepdims=True) + pf_cls * v_cls  # (Bb,1,C)

    # Output projection + bias.
    attn = attn.astype(wp_ref.dtype)
    out = _bmm(attn, wp) + bp_ref[...]                # (Bb, 1, C)
    o_ref[...] = out.astype(o_ref.dtype)


def cls_attention(z_cls, x_ctx, wq, wkv, wp, bp, *, num_heads,
                  block_b=16, compute_dtype=None):
    """z_cls: (B, 1, C), x_ctx: (B, N_ctx, C) -> (B, 1, C)."""
    B, one, C = z_cls.shape
    assert one == 1
    Bx, n_ctx, Cx = x_ctx.shape
    assert Bx == B and Cx == C
    assert C % num_heads == 0, "dim must be divisible by num_heads"
    hd = C // num_heads
    scale = hd ** -0.5
    out_dtype = z_cls.dtype

    # Pre-transposed / fused weights, built once in XLA outside the kernel.
    wq_t = wq.T * scale                         # scale folded into q projection
    wk_t = wkv[:C, :].T                         # kv Linear rows [0:C]  -> k
    wv_t = wkv[C:, :].T                         # kv Linear rows [C:2C] -> v
    wz = jnp.concatenate([wq_t, wk_t, wv_t], axis=1)        # (C, 3C)
    wkv_t = jnp.concatenate([wk_t, wv_t], axis=1)           # (C, 2C)
    wp_t = wp.T                                              # (C, C)
    bp3 = bp.reshape(1, 1, C).astype(jnp.float32)

    # Constant head-sum / head-expand (block 0/1) matrices.
    head_id = jnp.arange(C, dtype=jnp.int32) // hd
    hs = (head_id[:, None] == jnp.arange(num_heads, dtype=jnp.int32)[None, :]
          ).astype(jnp.float32)                              # (C, H)
    he = hs.T                                                # (H, C)

    if compute_dtype is not None:
        # bf16 MXU operands (v6e/v7x); softmax & accumulation stay f32.
        z_cls = z_cls.astype(compute_dtype)
        x_ctx = x_ctx.astype(compute_dtype)
        wz = wz.astype(compute_dtype)
        wkv_t = wkv_t.astype(compute_dtype)
        wp_t = wp_t.astype(compute_dtype)

    # Batch blocking (pad B up to a multiple of the block).
    bb = max(1, min(block_b, B))
    b_pad = -(-B // bb) * bb
    if b_pad != B:
        pad = b_pad - B
        z_cls = jnp.pad(z_cls, ((0, pad), (0, 0), (0, 0)))
        x_ctx = jnp.pad(x_ctx, ((0, pad), (0, 0), (0, 0)))

    out = pl.pallas_call(
        cls_attention_kernel,
        out_shape=jax.ShapeDtypeStruct((b_pad, 1, C), out_dtype),
        grid_spec=pltpu.PrefetchScalarGridSpec(
            num_scalar_prefetch=0,
            grid=(b_pad // bb,),
            in_specs=[
                pl.BlockSpec((bb, 1, C), lambda i: (i, 0, 0)),       # z_cls
                pl.BlockSpec((bb, n_ctx, C), lambda i: (i, 0, 0)),   # x_ctx
                pl.BlockSpec((C, 3 * C), lambda i: (0, 0)),          # wz
                pl.BlockSpec((C, 2 * C), lambda i: (0, 0)),          # wkv_t
                pl.BlockSpec((C, num_heads), lambda i: (0, 0)),      # hs
                pl.BlockSpec((num_heads, C), lambda i: (0, 0)),      # he
                pl.BlockSpec((C, C), lambda i: (0, 0)),              # wp_t
                pl.BlockSpec((1, 1, C), lambda i: (0, 0, 0)),        # bias
            ],
            out_specs=pl.BlockSpec((bb, 1, C), lambda i: (i, 0, 0)),
        ),
        compiler_params=pltpu.CompilerParams(
            dimension_semantics=("parallel",)),
    )(z_cls, x_ctx, wz, wkv_t, hs, he, wp_t, bp3)

    return out if b_pad == B else out[:B]


def cls_attention_ref(z_cls, x_ctx, wq, wkv, wp, bp, *, num_heads):
    """Pure-JAX reference mirroring the PyTorch forward."""
    x = jnp.concatenate([z_cls, x_ctx], axis=1)
    B, N, C = x.shape
    hd = C // num_heads
    scale = hd ** -0.5
    q = (z_cls @ wq.T).reshape(B, 1, num_heads, hd).transpose(0, 2, 1, 3)
    kv = (x @ wkv.T).reshape(B, N, 2, num_heads, hd).transpose(2, 0, 3, 1, 4)
    k, v = kv[0], kv[1]
    attn = (q @ jnp.swapaxes(k, -2, -1)) * scale
    attn = jax.nn.softmax(attn, axis=-1)
    out = (attn @ v).transpose(0, 2, 1, 3).reshape(B, 1, C)
    return out @ wp.T + bp


if __name__ == "__main__":
    B, C, num_heads = 5, 32, 4
    N_ctx = 7  # total sequence N = 1 + N_ctx = 8

    key = jax.random.PRNGKey(0)
    k_z, k_x, k_q, k_kv, k_p, k_b = jax.random.split(key, 6)

    z_cls = jax.random.normal(k_z, (B, 1, C), dtype=jnp.float32)
    x_ctx = jax.random.normal(k_x, (B, N_ctx, C), dtype=jnp.float32)

    # Deterministic synthetic parameters (shapes from the module __init__).
    # TODO(synk): spectral_norm reparametrization (power-iteration weight
    # normalization) is omitted; weights are initialized directly.
    wq = jax.random.normal(k_q, (C, C), dtype=jnp.float32) * 0.05        # q: Linear(C, C, bias=False)
    wkv = jax.random.normal(k_kv, (2 * C, C), dtype=jnp.float32) * 0.05  # kv: Linear(C, 2C, bias=False)
    wp = jax.random.normal(k_p, (C, C), dtype=jnp.float32) * 0.05        # proj: Linear(C, C)
    bp = jax.random.normal(k_b, (C,), dtype=jnp.float32) * 0.05

    # block_b=2 -> 3 grid steps (exercises batch blocking + batch padding).
    out = cls_attention(z_cls, x_ctx, wq, wkv, wp, bp,
                        num_heads=num_heads, block_b=2)
    out = jax.block_until_ready(out)

    ref = cls_attention_ref(z_cls, x_ctx, wq, wkv, wp, bp, num_heads=num_heads)
    assert out.shape == (B, 1, C)
    err = jnp.max(jnp.abs(out - ref))
    assert jnp.allclose(out, ref, rtol=1e-4, atol=1e-5), f"max abs err {err}"

    print("KERNEL_OK")
</pallas_src>

<mosaic_0001>
module attributes {stable_mosaic.version = 11 : i64} {
  func.func @cls_attention_kernel(%arg0: i32, %arg1: memref<2x1x32xf32, #tpu.memory_space<vmem>>, %arg2: memref<2x7x32xf32, #tpu.memory_space<vmem>>, %arg3: memref<32x96xf32, #tpu.memory_space<vmem>>, %arg4: memref<32x64xf32, #tpu.memory_space<vmem>>, %arg5: memref<32x4xf32, #tpu.memory_space<vmem>>, %arg6: memref<4x32xf32, #tpu.memory_space<vmem>>, %arg7: memref<32x32xf32, #tpu.memory_space<vmem>>, %arg8: memref<1x1x32xf32, #tpu.memory_space<vmem>>, %arg9: memref<2x1x32xf32, #tpu.memory_space<vmem>>) attributes {dimension_semantics = [#tpu.dimension_semantics<parallel>], iteration_bounds = array<i64: 3>, scalar_prefetch = 0 : i64, scratch_operands = 0 : i64, tpu.core_type = #tpu.core_type<tc>, window_params = [{transform_indices = @transform_0, window_bounds = array<i64: 2, 1, 32>}, {transform_indices = @transform_1, window_bounds = array<i64: 2, 7, 32>}, {pipeline_mode = #tpu.pipeline_mode<synchronous>, transform_indices = @transform_2, window_bounds = array<i64: 32, 96>}, {pipeline_mode = #tpu.pipeline_mode<synchronous>, transform_indices = @transform_3, window_bounds = array<i64: 32, 64>}, {pipeline_mode = #tpu.pipeline_mode<synchronous>, transform_indices = @transform_4, window_bounds = array<i64: 32, 4>}, {pipeline_mode = #tpu.pipeline_mode<synchronous>, transform_indices = @transform_5, window_bounds = array<i64: 4, 32>}, {pipeline_mode = #tpu.pipeline_mode<synchronous>, transform_indices = @transform_6, window_bounds = array<i64: 32, 32>}, {pipeline_mode = #tpu.pipeline_mode<synchronous>, transform_indices = @transform_7, window_bounds = array<i64: 1, 1, 32>}, {transform_indices = @transform_8, window_bounds = array<i64: 2, 1, 32>}]} {
    %c0 = arith.constant 0 : index
    %c0_0 = arith.constant 0 : index
    %c0_1 = arith.constant 0 : index
    %0 = vector.load %arg1[%c0, %c0_0, %c0_1] : memref<2x1x32xf32, #tpu.memory_space<vmem>>, vector<2x1x32xf32>
    %c0_2 = arith.constant 0 : index
    %c0_3 = arith.constant 0 : index
    %c0_4 = arith.constant 0 : index
    %1 = vector.load %arg2[%c0_2, %c0_3, %c0_4] : memref<2x7x32xf32, #tpu.memory_space<vmem>>, vector<2x7x32xf32>
    %c0_5 = arith.constant 0 : index
    %c0_6 = arith.constant 0 : index
    %2 = vector.load %arg3[%c0_5, %c0_6] : memref<32x96xf32, #tpu.memory_space<vmem>>, vector<32x96xf32>
    %3 = vector.shape_cast %2 : vector<32x96xf32> to vector<1x32x96xf32>
    %4 = vector.broadcast %3 : vector<1x32x96xf32> to vector<2x32x96xf32>
    %c0_7 = arith.constant 0 : index
    %c0_8 = arith.constant 0 : index
    %5 = vector.load %arg4[%c0_7, %c0_8] : memref<32x64xf32, #tpu.memory_space<vmem>>, vector<32x64xf32>
    %6 = vector.shape_cast %5 : vector<32x64xf32> to vector<1x32x64xf32>
    %7 = vector.broadcast %6 : vector<1x32x64xf32> to vector<2x32x64xf32>
    %c0_9 = arith.constant 0 : index
    %c0_10 = arith.constant 0 : index
    %8 = vector.load %arg5[%c0_9, %c0_10] : memref<32x4xf32, #tpu.memory_space<vmem>>, vector<32x4xf32>
    %9 = vector.shape_cast %8 : vector<32x4xf32> to vector<1x32x4xf32>
    %10 = vector.broadcast %9 : vector<1x32x4xf32> to vector<2x32x4xf32>
    %c0_11 = arith.constant 0 : index
    %c0_12 = arith.constant 0 : index
    %11 = vector.load %arg6[%c0_11, %c0_12] : memref<4x32xf32, #tpu.memory_space<vmem>>, vector<4x32xf32>
    %12 = vector.shape_cast %11 : vector<4x32xf32> to vector<1x4x32xf32>
    %13 = vector.broadcast %12 : vector<1x4x32xf32> to vector<2x4x32xf32>
    %c0_13 = arith.constant 0 : index
    %c0_14 = arith.constant 0 : index
    %14 = vector.load %arg7[%c0_13, %c0_14] : memref<32x32xf32, #tpu.memory_space<vmem>>, vector<32x32xf32>
    %15 = vector.shape_cast %14 : vector<32x32xf32> to vector<1x32x32xf32>
    %16 = vector.broadcast %15 : vector<1x32x32xf32> to vector<2x32x32xf32>
    %cst = arith.constant dense<0.000000e+00> : vector<2x1x96xf32>
    %17 = tpu.matmul %0, %4, %cst {dimension_numbers = #tpu.dot_dimension_numbers<[2], [1], [1], [2], [0, 0, 0, 1, 1, 2], [0], [0]>} : vector<2x1x32xf32>, vector<2x32x96xf32>, vector<2x1x96xf32> -> vector<2x1x96xf32>
    %18 = vector.extract_strided_slice %17 {offsets = [0, 0, 0], sizes = [2, 1, 32], strides = [1, 1, 1]} : vector<2x1x96xf32> to vector<2x1x32xf32>
    %19 = vector.extract_strided_slice %17 {offsets = [0, 0, 32], sizes = [2, 1, 32], strides = [1, 1, 1]} : vector<2x1x96xf32> to vector<2x1x32xf32>
    %20 = vector.extract_strided_slice %17 {offsets = [0, 0, 64], sizes = [2, 1, 32], strides = [1, 1, 1]} : vector<2x1x96xf32> to vector<2x1x32xf32>
    %cst_15 = arith.constant dense<0.000000e+00> : vector<2x7x64xf32>
    %21 = tpu.matmul %1, %7, %cst_15 {dimension_numbers = #tpu.dot_dimension_numbers<[2], [1], [1], [2], [0, 0, 0, 1, 1, 2], [0], [0]>} : vector<2x7x32xf32>, vector<2x32x64xf32>, vector<2x7x64xf32> -> vector<2x7x64xf32>
    %22 = vector.extract_strided_slice %21 {offsets = [0, 0, 0], sizes = [2, 7, 32], strides = [1, 1, 1]} : vector<2x7x64xf32> to vector<2x7x32xf32>
    %23 = vector.extract_strided_slice %21 {offsets = [0, 0, 32], sizes = [2, 7, 32], strides = [1, 1, 1]} : vector<2x7x64xf32> to vector<2x7x32xf32>
    %24 = vector.broadcast %18 : vector<2x1x32xf32> to vector<2x7x32xf32>
    %25 = arith.mulf %22, %24 : vector<2x7x32xf32>
    %cst_16 = arith.constant dense<0.000000e+00> : vector<2x7x4xf32>
    %26 = tpu.matmul %25, %10, %cst_16 {dimension_numbers = #tpu.dot_dimension_numbers<[2], [1], [1], [2], [0, 0, 0, 1, 1, 2], [0], [0]>} : vector<2x7x32xf32>, vector<2x32x4xf32>, vector<2x7x4xf32> -> vector<2x7x4xf32>
    %27 = arith.mulf %19, %18 : vector<2x1x32xf32>
    %cst_17 = arith.constant dense<0.000000e+00> : vector<2x1x4xf32>
    %28 = tpu.matmul %27, %10, %cst_17 {dimension_numbers = #tpu.dot_dimension_numbers<[2], [1], [1], [2], [0, 0, 0, 1, 1, 2], [0], [0]>} : vector<2x1x32xf32>, vector<2x32x4xf32>, vector<2x1x4xf32> -> vector<2x1x4xf32>
    %cst_18 = arith.constant dense<0xFF800000> : vector<2x4xf32>
    %29 = vector.multi_reduction <maximumf>, %26, %cst_18 [1] : vector<2x7x4xf32> to vector<2x4xf32>
    %30 = vector.shape_cast %29 : vector<2x4xf32> to vector<2x1x4xf32>
    %31 = arith.maximumf %30, %28 : vector<2x1x4xf32>
    %32 = vector.broadcast %31 : vector<2x1x4xf32> to vector<2x7x4xf32>
    %33 = arith.subf %26, %32 : vector<2x7x4xf32>
    %34 = math.exp %33 : vector<2x7x4xf32>
    %35 = arith.subf %28, %31 : vector<2x1x4xf32>
    %36 = math.exp %35 : vector<2x1x4xf32>
    %cst_19 = arith.constant dense<0.000000e+00> : vector<2x4xf32>
    %37 = vector.multi_reduction <add>, %34, %cst_19 [1] : vector<2x7x4xf32> to vector<2x4xf32>
    %38 = vector.shape_cast %37 : vector<2x4xf32> to vector<2x1x4xf32>
    %39 = arith.addf %38, %36 : vector<2x1x4xf32>
    %40 = tpu.reciprocal %39 : vector<2x1x4xf32> -> vector<2x1x4xf32>
    %41 = vector.broadcast %40 : vector<2x1x4xf32> to vector<2x7x4xf32>
    %42 = arith.mulf %34, %41 : vector<2x7x4xf32>
    %43 = arith.mulf %36, %40 : vector<2x1x4xf32>
    %cst_20 = arith.constant dense<0.000000e+00> : vector<2x7x32xf32>
    %44 = tpu.matmul %42, %13, %cst_20 {dimension_numbers = #tpu.dot_dimension_numbers<[2], [1], [1], [2], [0, 0, 0, 1, 1, 2], [0], [0]>} : vector<2x7x4xf32>, vector<2x4x32xf32>, vector<2x7x32xf32> -> vector<2x7x32xf32>
    %cst_21 = arith.constant dense<0.000000e+00> : vector<2x1x32xf32>
    %45 = tpu.matmul %43, %13, %cst_21 {dimension_numbers = #tpu.dot_dimension_numbers<[2], [1], [1], [2], [0, 0, 0, 1, 1, 2], [0], [0]>} : vector<2x1x4xf32>, vector<2x4x32xf32>, vector<2x1x32xf32> -> vector<2x1x32xf32>
    %46 = arith.mulf %44, %23 : vector<2x7x32xf32>
    %cst_22 = arith.constant dense<0.000000e+00> : vector<2x32xf32>
    %47 = vector.multi_reduction <add>, %46, %cst_22 [1] : vector<2x7x32xf32> to vector<2x32xf32>
    %48 = vector.shape_cast %47 : vector<2x32xf32> to vector<2x1x32xf32>
    %49 = arith.mulf %45, %20 : vector<2x1x32xf32>
    %50 = arith.addf %48, %49 : vector<2x1x32xf32>
    %cst_23 = arith.constant dense<0.000000e+00> : vector<2x1x32xf32>
    %51 = tpu.matmul %50, %16, %cst_23 {dimension_numbers = #tpu.dot_dimension_numbers<[2], [1], [1], [2], [0, 0, 0, 1, 1, 2], [0], [0]>} : vector<2x1x32xf32>, vector<2x32x32xf32>, vector<2x1x32xf32> -> vector<2x1x32xf32>
    %c0_24 = arith.constant 0 : index
    %c0_25 = arith.constant 0 : index
    %c0_26 = arith.constant 0 : index
    %52 = vector.load %arg8[%c0_24, %c0_25, %c0_26] : memref<1x1x32xf32, #tpu.memory_space<vmem>>, vector<1x1x32xf32>
    %53 = vector.broadcast %52 : vector<1x1x32xf32> to vector<2x1x32xf32>
    %54 = arith.addf %51, %53 : vector<2x1x32xf32>
    %c0_27 = arith.constant 0 : index
    %c0_28 = arith.constant 0 : index
    %c0_29 = arith.constant 0 : index
    %55 = vector.load %arg9[%c0_27, %c0_28, %c0_29] : memref<2x1x32xf32, #tpu.memory_space<vmem>>, vector<2x1x32xf32>
    tpu.vector_store %arg9[%c0_27, %c0_28, %c0_29], %54 {strides = array<i32>} : memref<2x1x32xf32, #tpu.memory_space<vmem>>, vector<2x1x32xf32>,
    return
  }
  func.func @transform_0(%arg0: i32) -> (i32, i32, i32) {
    %c0_i32 = arith.constant 0 : i32
    %c0_i32_0 = arith.constant 0 : i32
    %c0_i32_1 = arith.constant 0 : i32
    return %arg0, %c0_i32, %c0_i32_0 : i32, i32, i32
  }
  func.func @transform_1(%arg0: i32) -> (i32, i32, i32) {
    %c0_i32 = arith.constant 0 : i32
    %c0_i32_0 = arith.constant 0 : i32
    %c0_i32_1 = arith.constant 0 : i32
    return %arg0, %c0_i32, %c0_i32_0 : i32, i32, i32
  }
  func.func @transform_2(%arg0: i32) -> (i32, i32) {
    %c0_i32 = arith.constant 0 : i32
    %c0_i32_0 = arith.constant 0 : i32
    %c0_i32_1 = arith.constant 0 : i32
    return %c0_i32, %c0_i32_0 : i32, i32
  }
  func.func @transform_3(%arg0: i32) -> (i32, i32) {
    %c0_i32 = arith.constant 0 : i32
    %c0_i32_0 = arith.constant 0 : i32
    %c0_i32_1 = arith.constant 0 : i32
    return %c0_i32, %c0_i32_0 : i32, i32
  }
  func.func @transform_4(%arg0: i32) -> (i32, i32) {
    %c0_i32 = arith.constant 0 : i32
    %c0_i32_0 = arith.constant 0 : i32
    %c0_i32_1 = arith.constant 0 : i32
    return %c0_i32, %c0_i32_0 : i32, i32
  }
  func.func @transform_5(%arg0: i32) -> (i32, i32) {
    %c0_i32 = arith.constant 0 : i32
    %c0_i32_0 = arith.constant 0 : i32
    %c0_i32_1 = arith.constant 0 : i32
    return %c0_i32, %c0_i32_0 : i32, i32
  }
  func.func @transform_6(%arg0: i32) -> (i32, i32) {
    %c0_i32 = arith.constant 0 : i32
    %c0_i32_0 = arith.constant 0 : i32
    %c0_i32_1 = arith.constant 0 : i32
    return %c0_i32, %c0_i32_0 : i32, i32
  }
  func.func @transform_7(%arg0: i32) -> (i32, i32, i32) {
    %c0_i32 = arith.constant 0 : i32
    %c0_i32_0 = arith.constant 0 : i32
    %c0_i32_1 = arith.constant 0 : i32
    %c0_i32_2 = arith.constant 0 : i32
    return %c0_i32, %c0_i32_0, %c0_i32_1 : i32, i32, i32
  }
  func.func @transform_8(%arg0: i32) -> (i32, i32, i32) {
    %c0_i32 = arith.constant 0 : i32
    %c0_i32_0 = arith.constant 0 : i32
    %c0_i32_1 = arith.constant 0 : i32
    return %arg0, %c0_i32, %c0_i32_0 : i32, i32, i32
  }
}

</mosaic_0001>

<bundles_post_ra>
// kernel: tpu_custom_call.1
= control target key start
LH: loop header
LB: loop body
LE: loop exit
PB: predicated region body
PF: predicated region fallthrough
CT: control target
= control target key end

     0   :  { %13 = vsyncpa [#allocation3], 0  ;;  %s2622_s0 = inlined_call_operand.vmem [shape: f32[6,1,32], index: 0, kind: input, shape index: {}]   ;;  %s2623_s1 = inlined_call_operand.hbm [shape: f32[6,7,32], index: 1, kind: input, shape index: {}]   ;;  %s2624_s2 = inlined_call_operand.vmem [shape: f32[32,96], index: 2, kind: input, shape index: {}]   ;;  %s2625_s3 = inlined_call_operand.hbm [shape: f32[32,64], index: 3, kind: input, shape index: {}]   ;;  %s2626_s4 = inlined_call_operand.vmem [shape: f32[32,4], index: 4, kind: input, shape index: {}]   ;;  %s2627_s5 = inlined_call_operand.vmem [shape: f32[4,32], index: 5, kind: input, shape index: {}]   ;;  %s2628_s6 = inlined_call_operand.hbm [shape: f32[32,32], index: 6, kind: input, shape index: {}]   ;;  %s2629_s7 = inlined_call_operand.vmem [shape: f32[1,1,32], index: 7, kind: input, shape index: {}]   ;;  %s2630_s8 = inlined_call_operand.hbm [shape: f32[6,1,32], index: 8, kind: output, shape index: {}]  }
   0x1   :  { %15 = vsyncpa [#allocation3 + $0x1], 0 }
   0x2   :  { %16 = vsyncpa [#allocation6], 0 }
   0x3   :  { %17 = vsyncpa [#allocation4], 0 }
   0x4   :  { %19 = vsyncpa [#allocation4 + $0x1], 0  ;;  %s2261_s27 = smov 0   ;;  %s2263_s28 = smov 0  }
   0x5   :  { %s2265_s29 = smov 0   ;;  %s2267_s30 = smov 0  }
   0x6 LB: > { %s2282_s9 = sadd.s32 4294967295, %s2200_s30   ;;  %s1668_s10 = sadd.s32 4294967294, %s2200_s30   ;;  %s2200_s30 = sphi %s2267_s30, %s2653_s30   ;;  %s2196_s29 = sphi %s2265_s29, %s2652_s29   ;;  %s2192_s28 = sphi %s2263_s28, %s2651_s28   ;;  %s2188_s27 = sphi %s2261_s27, %s2650_s27  }
   0x7   : > { %p71_p0 = scmp.ne.s32.totalorder %s2192_s28, %s2188_s27  ;;  %p2631_p1 = scmp.eq.s32.totalorder %s2282_s9, 0 }
   0x8   : > { %p227_p3 = scmp.eq.s32.totalorder %s1668_s10, 2  ;;  %p1669_p5 = scmp.ge.s32.totalorder %s2200_s30, 1 }
   0x9   : > { %p2291_p4 = por %p2631_p1, %p71_p0  ;;  %p234_p7 = scmp.lt.s32.totalorder %s2200_s30, 4 }
   0xa   : > { %p2296_p6 = por %p227_p3, %p71_p0  ;;  %s2202_s14 = smov [#allocation5]  }
   0xb   : > { %s2636_s11 = scalar_select %p2291_p4, 1, 0 }
   0xc   : > { %s2637_s12 = scalar_select %p2296_p6, 1, 0 }
   0xd   : > { %p2301_p8 = pnand %p1669_p5, %p234_p7  ;;  %s249_s15 = sshll.u32 %s2202_s14, 4  ;;  %s250_s15 = int_to_ptr.vmem [resolvable:$true] %s249_s15 }
   0xe   : > { %s2203_s17 = smov [#allocation7]   ;;  %s2044_s21 = scalar_lea.hbm %s2625_s3, 512 }
   0xf   : > { %s2638_s13 = scalar_select %p2301_p8, 1, 0 }
  0x10   : > { %p1967_p9 = pneg %p2301_p8  ;;  %s268_s18 = sshll.u32 %s2203_s17, 4  ;;  %s2313_s18 = int_to_ptr.vmem [resolvable:$true] %s268_s18 }
  0x11   : > { %p2045_p11 = scmp.ne.s32.totalorder %s2625_s3, %s2044_s21  ;;  %p2051_p3 = scmp.lt.u32.totalorder %s2044_s21, %s2625_s3 }
  0x12   : > { %p2309_p10 = pnand %p1967_p9, %p2631_p1 }
  0x14   : > { %p2046_p12 = pneg %p2309_p10 }
  0x16   : > { %p2047_p13 = pnand %p2046_p12, %p2045_p11 }
  0x18   : > { %p2048_p0 = pneg %p2047_p13 }
  0x1a   : > { %p2053_p5 = pnand %p2051_p3, %p2048_p0 }
  0x1c   : > { %2056 = shalt.err (!%p2053_p5)
}
  0x1d   : > { %s2057_s26 = scalar_lea.vmem %s250_s15, 512  ;;  %p2065_p2 = scmp.lt.s32.totalorder %s250_s15, %s250_s15 }
  0x1e   : > { %p2058_p7 = scmp.ne.s32.totalorder %s250_s15, %s2057_s26  ;;  %p2066_p6 = scmp.lt.s32.totalorder %s2057_s26, %s2057_s26 }
  0x20   : > { %p2060_p9 = pnand %p2058_p7, %p2046_p12  ;;  %p2067_p4 = por %p2066_p6, %p2065_p2 }
  0x22   : > { %p2061_p1 = pneg %p2060_p9 }
  0x24   : > { %p2068_p8 = pnand %p2067_p4, %p2061_p1 }
  0x26   : > { %2071 = shalt.err (!%p2068_p8)
}
  0x27   : > { %s2634_s10 = smov 128   ;;  %s2635_s14 = smov 8  }
  0x28   : > { %1970 = dma.hbm_to_vmem [thread:$0]  (!%p2309_p10), %s2625_s3, 512, %s250_s15, [#allocation6], %s2634_s10, %s2634_s10, %s2635_s14  }
  0x29   : > { %s2072_s22 = scalar_lea.hbm %s2628_s6, 512 }
  0x2a   : > { %p2073_p1 = scmp.ne.s32.totalorder %s2628_s6, %s2072_s22  ;;  %p2079_p6 = scmp.lt.u32.totalorder %s2072_s22, %s2628_s6 }
  0x2c   : > { %p2075_p2 = pnand %p2073_p1, %p2046_p12 }
  0x2e   : > { %p2076_p4 = pneg %p2075_p2 }
  0x30   : > { %p2081_p8 = pnand %p2079_p6, %p2076_p4 }
  0x32   : > { %2084 = shalt.err (!%p2081_p8)
}
  0x33   : > { %s2085_s15 = scalar_lea.vmem %s2313_s18, 512  ;;  %p2093_p3 = scmp.lt.s32.totalorder %s2313_s18, %s2313_s18 }
  0x34   : > { %p2086_p11 = scmp.ne.s32.totalorder %s2313_s18, %s2085_s15  ;;  %p2094_p5 = scmp.lt.s32.totalorder %s2085_s15, %s2085_s15 }
  0x36   : > { %p2088_p13 = pnand %p2086_p11, %p2046_p12  ;;  %p2095_p7 = por %p2094_p5, %p2093_p3 }
  0x38   : > { %p2089_p0 = pneg %p2088_p13 }
  0x3a   : > { %p2096_p9 = pnand %p2095_p7, %p2089_p0 }
  0x3c   : > { %2099 = shalt.err (!%p2096_p9)
}
  0x3d   : > { %1973 = dma.hbm_to_vmem [thread:$0]  (!%p2309_p10), %s2628_s6, 512, %s2313_s18, [#allocation6], %s2634_s10, %s2634_s10, %s2635_s14  }
  0x3e   : > { %s2369_s16 = sadd.s32 1, %s2200_s30   ;;  %s58_s20 = sadd.s32 1, %s2196_s29 }
  0x3f   : > { %s55_s21 = ssub.s32 %s2200_s30, %s2369_s16  ;;  %p65_p12 = scmp.ne.s32.totalorder %s2196_s29, %s2192_s28 }
  0x40   : > { %p56_p1 = scmp.eq.s32.totalorder %s55_s21, 0  ;;  %p66_p2 = scmp.eq.s32.totalorder %s2200_s30, 0 }
  0x41   : > { %p2640_p4 = scmp.eq.s32.totalorder %s2282_s9, 2  ;;  %p1984_p8 = scmp.lt.s32.totalorder %s2200_s30, 3 }
  0x42   : > { %s2385_s23 = scalar_select %p56_p1, %s2196_s29, %s58_s20  }
  0x43   : > { %p2379_p6 = por %p2640_p4, %p65_p12  ;;  %p67_p11 = por %p66_p2, %p65_p12 }
  0x44   : > { %s293_s24 = sand.u32 1, %s2196_s29   ;;  %s1705_s18 = sshll.u32 %s2200_s30, 8 }
  0x45   : > { %s1673_s25 = sshll.u32 %s293_s24, 4  ;;  %s2392_s17 = scalar_lea.hbm %s2623_s1, %s1705_s18 }
  0x46   : > { %s297_s19 = scalar_lea.vmem [#allocation2], %s1673_s25  ;;  %p2396_p10 = pnand %p1984_p8, %p67_p11 }
  0x47   : > { %s304_s21 = sshll.u32 %s297_s19, 4  ;;  %s2400_s10 = scalar_lea.sflag [#allocation3], %s293_s24  ;;  %s2394_s21 = int_to_ptr.vmem [resolvable:$true] %s304_s21 }
  0x48   : > { %s2100_s14 = scalar_lea.hbm %s2392_s17, 256  ;;  %p2102_p0 = pneg %p2396_p10 }
  0x49   : > { %p2101_p13 = scmp.ne.s32.totalorder %s2392_s17, %s2100_s14  ;;  %s2105_s26 = scalar_lea.hbm %s2623_s1, 768 }
  0x4a   : > { %p2106_p7 = scmp.lt.u32.totalorder %s2392_s17, %s2623_s1  ;;  %p2107_p9 = scmp.lt.u32.totalorder %s2105_s26, %s2100_s14 }
  0x4b   : > { %p2103_p3 = pnand %p2102_p0, %p2101_p13  ;;  %p2109_p1 = scmp.lt.u32.totalorder %s2100_s14, %s2392_s17 }
  0x4c   : > { %p2108_p12 = por %p2107_p9, %p2106_p7 }
  0x4d   : > { %p2104_p5 = pneg %p2103_p3 }
  0x4e   : > { %p2110_p2 = por %p2109_p1, %p2108_p12 }
  0x50   : > { %p2111_p4 = pnand %p2110_p2, %p2104_p5 }
  0x52   : > { %2114 = shalt.err (!%p2111_p4)
}
  0x53   : > { %s2115_s24 = scalar_lea.vmem %s2394_s21, 256  ;;  %s2206_s25 = smov [#allocation2]  }
  0x54   : > { %p2116_p8 = scmp.ne.s32.totalorder %s2394_s21, %s2115_s24  ;;  %s2120_s18 = sshll.u32 %s2206_s25, 4  ;;  %s2121_s18 = int_to_ptr.vmem [resolvable:$false] %s2120_s18 }
  0x55   : > { %s2122_s15 = scalar_lea.vmem %s2121_s18, 512  ;;  %p2123_p3 = scmp.lt.s32.totalorder %s2394_s21, %s2121_s18 }
  0x56   : > { %p2118_p11 = pnand %p2116_p8, %p2102_p0  ;;  %p2124_p7 = scmp.lt.s32.totalorder %s2122_s15, %s2115_s24 }
  0x58   : > { %p2119_p13 = pneg %p2118_p11  ;;  %p2125_p9 = por %p2124_p7, %p2123_p3 }
  0x5a   : > { %p2126_p12 = pnand %p2125_p9, %p2119_p13 }
  0x5c   : > { %2129 = shalt.err (!%p2126_p12)
}
  0x5d   : > { %s2643_s14 = smov 8   ;;  %s2644_s26 = smov 128  }
  0x5e   : > { %1977 = dma.hbm_to_vmem [thread:$0]  (!%p2396_p10), %s2392_s17, 256, %s2394_s21, %s2400_s10, %s2644_s26, %s2644_s26, %s2643_s14  }
  0x5f   : > { %p2645_p0 = scmp.ne.s32.totalorder %s2638_s13, 0 }
  0x60   : > { %s2434_s19 = sand.u32 (!%p2645_p0), 1, %s2192_s28   ;;  %p2646_p5 = scmp.ne.s32.totalorder (!%p2645_p0), %s2636_s11, 0 }
  0x61   : > { %316 = sbr.rel (%p2645_p0) target bundleno = 1285 (0x505), region = 52  ;;  %s1677_s24 = sshll.u32 (!%p2645_p0), %s2434_s19, 4 }
  0x62   : > { %s319_s25 = scalar_lea.sflag (!%p2645_p0), [#allocation3], %s2434_s19  ;;  %s2438_s18 = scalar_lea.vmem (!%p2645_p0), [#allocation2], %s1677_s24 }
  0x68   : > { %2175 = dma.done.wait (%p2646_p5), %s319_s25, 256  }
  0x69   : > { %2177 = vsyncadd (%p2646_p5), %s319_s25, 4294967040  ;;  %p2647_p10 = scmp.eq.s32.totalorder %s2282_s9, 0 }
  0x6b   : > { %2179 = dma.done.wait (%p2647_p10), [#allocation6], 1024   ;;  %p2648_p1 = pmov %p2647_p10 }
  0x6c   : > { %s1681_s13 = sshll.u32 %s2282_s9, 1  ;;  %v2207_v0 = vmov 0.0|0.0   ;;  %vm2208_vm0 = vmmov 0   ;;  %v2209_v1 = vmov 0.0   ;;  %v378_v2 = vld [vmem:[%s2624_s2] sm:$0xff]  ;;  %v379_v3 = vld [vmem:[%s2624_s2 + $0x8] sm:$0xff]  ;;  %v688_v24 = vlaneseq }
  0x6d   : > { %2181 = vsyncadd (%p2648_p1), [#allocation6], 4294966272  ;;  %1895 = vmatprep.subr.bf16.mxu0 %v2207_v0  ;;  %1901 = vmatprep.subr.bf16.mxu1 %v2207_v0  ;;  %p368_p2 = scmp.lt.s32.totalorder %s1681_s13, 5  ;;  %v380_v4 = vld [vmem:[%s2624_s2 + $0x10] sm:$0xff]  ;;  %v1896_v5 = vpack.c.bf16 %v379_v3, %v378_v2  ;;  %v381_v6 = vld [vmem:[%s2624_s2 + $0x18] sm:$0xff]  ;;  %vm395_vm1 = vcmask 261120  }
  0x6e   : > { %1773 = vmatprep.mubr.msk.f32.mxu0 %vm2208_vm0, %v2209_v1  ;;  %1784 = vmatprep.mubr.msk.f32.mxu1 %vm2208_vm0, %v2209_v1  ;;  %v1899_v7 = vpack.c.bf16 %v381_v6, %v380_v4  ;;  %v382_v8 = vld [vmem:[#allocation5] sm:$0xff]  ;;  %v383_v9 = vld [vmem:[#allocation5 + $0x8] sm:$0xff]  ;;  %v384_v13 = vld [vmem:[#allocation5 + $0x10] sm:$0xff]  ;;  %v689_v25 = vshrl.u32 %v688_v24, 7  ;;  %s2210_s26 = smov 32   ;;  %s2211_s24 = smov 96  }
  0x6f   : > { %s2655_s13 = smov (!%p368_p2, %s1681_s13), 5  ;;  %1897 = vmatpush3.bf16.msra.mxu0 %v1896_v5  ;;  %1903 = vmatpush3.bf16.msra.mxu1 %v1896_v5  ;;  %v1908_v12 = vpack.c.bf16 %v383_v9, %v382_v8  ;;  %v385_v14 = vld [vmem:[#allocation5 + $0x18] sm:$0xff]  ;;  %v376_v16 = vld [vmem:[%s2438_s18] sm:$0x7f]  ;;  %v387_v19 = vld [vmem:[%s2626_s4 + $0x8] sm:$0xff]  ;;  %s2212_s25 = smov 64  }
  0x70   : > { %1898 = vmatprep.subr.bf16.mxu0 %v2207_v0  ;;  %1904 = vmatprep.subr.bf16.mxu1 %v2207_v0  ;;  %s370_s11 = scalar_lea.vmem %s2622_s0, %s2655_s13  ;;  %v1911_v15 = vpack.c.bf16 %v385_v14, %v384_v13  ;;  %v377_v17 = vld [vmem:[%s2438_s18 + $0x8] sm:$0x7f]  ;;  %v386_v18 = vld [vmem:[%s2626_s4] sm:$0xff]  ;;  %v388_v21 = vld [vmem:[%s2626_s4 + $0x10] sm:$0xff]  ;;  %v2508_v30 = vsub.s32 0, %v689_v25  ;;  %vm1075_vm2 = vcmask 1043456  }
  0x71   : > { %v374_v10 = vld [vmem:[%s370_s11] sm:$0x1]  ;;  %v375_v11 = vld [vmem:[%s370_s11 + $0x1] sm:$0x1]  ;;  %v1920_v20 = vpack.c.bf16 %v387_v19, %v386_v18  ;;  %v389_v22 = vld [vmem:[%s2626_s4 + $0x18] sm:$0xff]  ;;  %vm1004_vm3 = vcmask 30720  }
  0x72   : > { %v1923_v23 = vpack.c.bf16 %v389_v22, %v388_v21  ;;  %v2531_v49 = vld [vmem:[%s2627_s5] sm:$0xf]  ;;  %vm1071_vm4 = vcmask 31744   ;;  %vm1378_vm5 = vcmask 260096   ;;  %s1680_s10 = sshll.u32 %s2434_s19, 1  ;;  %vm1550_vm6 = vcmask 253952  }
  0x73   : > { %1900 = vmatpush3.bf16.msra.mxu0 %v1899_v7  ;;  %1906 = vmatpush3.bf16.msra.mxu1 %v1899_v7  ;;  %s366_s21 = scalar_lea.vmem [#allocation8], %s1680_s10  ;;  %s1706_s15 = sshll.u32 %s2282_s9, 5 }
  0x74   : > { %1907 = vmatprep.subr.bf16.mxu0 %v2207_v0  ;;  %1913 = vmatprep.subr.bf16.mxu1 %v2207_v0  ;;  %s1567_s20 = sshll.u32 %s366_s21, 4  ;;  %s2213_s9 = smov [#allocation8]   ;;  %s2574_s20 = int_to_ptr.vmem [resolvable:$true] %s1567_s20 }
  0x75   : > { %s2130_s11 = scalar_lea.vmem %s2574_s20, 32  ;;  %s2134_s13 = sshll.u32 %s2213_s9, 4  ;;  %s2135_s13 = int_to_ptr.vmem [resolvable:$false] %s2134_s13 }
  0x76   : > { %1774 = vmatmul.mubr.msk.f32.vlgmr.msra.gmra.mrb[0].mxu0 %vm395_vm1, %v374_v10  ;;  %1785 = vmatmul.mubr.msk.f32.vlgmr.msra.gmra.mrb[0].mxu1 %vm395_vm1, %v375_v11  ;;  %p2131_p4 = scmp.ne.s32.totalorder %s2574_s20, %s2130_s11  ;;  %s2136_s10 = scalar_lea.vmem %s2135_s13, 64 }
  0x77   : > { %1909 = vmatpush3.bf16.msra.mxu0 %v1908_v12  ;;  %1915 = vmatpush3.bf16.msra.mxu1 %v1908_v12  ;;  %p2137_p13 = scmp.lt.s32.totalorder %s2574_s20, %s2135_s13  ;;  %p2138_p3 = scmp.lt.s32.totalorder %s2136_s10, %s2130_s11 }
  0x78   : > { %1910 = vmatprep.subr.bf16.mxu0 %v2207_v0  ;;  %1916 = vmatprep.subr.bf16.mxu1 %v2207_v0  ;;  %p2132_p8 = pnand %p2131_p4, %p2379_p6 }
  0x79   : > { %1795 = vmatprep.mubr.msk.f32.mxu0 %vm2208_vm0, %v2209_v1  ;;  %1806 = vmatprep.mubr.msk.f32.mxu1 %vm2208_vm0, %v2209_v1  ;;  %p2139_p7 = por %p2138_p3, %p2137_p13 }
  0x7a   : > { %p2133_p11 = pneg %p2132_p8 }
  0x7b   : > { %1912 = vmatpush3.bf16.msra.mxu0 %v1911_v15  ;;  %1918 = vmatpush3.bf16.msra.mxu1 %v1911_v15 }
  0x7c   : > { %1919 = vmatprep.subr.bf16.mxu0 %v2207_v0  ;;  %1925 = vmatprep.subr.bf16.mxu1 %v2207_v0  ;;  %p2140_p9 = pnand %p2139_p7, %p2133_p11 }
  0x7e   : > { %1796 = vmatmul.mubr.msk.f32.vlgmr.msra.gmra.mrb[2].mxu0 %vm395_vm1, %v376_v16  ;;  %1807 = vmatmul.mubr.msk.f32.vlgmr.msra.gmra.mrb[2].mxu1 %vm395_vm1, %v377_v17 }
  0x7f   : > { %1817 = vmatprep.mubr.msk.f32.mxu0 %vm2208_vm0, %v2209_v1  ;;  %1828 = vmatprep.mubr.msk.f32.mxu1 %vm2208_vm0, %v2209_v1 }
  0x80   : > { %1921 = vmatpush3.bf16.msra.mxu0 %v1920_v20  ;;  %1927 = vmatpush3.bf16.msra.mxu1 %v1920_v20 }
  0x81   : > { %1922 = vmatprep.subr.bf16.mxu0 %v2207_v0  ;;  %1928 = vmatprep.subr.bf16.mxu1 %v2207_v0 }
  0x84   : > { %1924 = vmatpush3.bf16.msra.mxu0 %v1923_v23  ;;  %1930 = vmatpush3.bf16.msra.mxu1 %v1923_v23 }
  0x85   : > { %1931 = vmatprep.subr.bf16.mxu0 %v2207_v0  ;;  %1937 = vmatprep.subr.bf16.mxu1 %v2207_v0 }
 0x149   : > { %v465_v26 = vpop.f32.mrb[0].mxu0  ;;  %v538_v27 = vpop.f32.mrb[0].mxu1 }
 0x14a   : > { %846 = vrot.lane.b32.xlu0 %v465_v26, %s2210_s26  ;;  %v1775_v28 = vpop.f32.mrb[1].mxu0  ;;  %v1786_v29 = vpop.f32.mrb[1].mxu1  ;;  %v691_v31 = vrot.slane %v465_v26, %v2508_v30  ;;  %v695_v32 = vrot.slane %v538_v27, %v2508_v30 }
 0x14e   : > { %848 = vrot.lane.b32.xlu0 %v538_v27, %s2210_s26 }
 0x151   : > { %v611_v33 = vpop.f32.mrb[2].mxu0  ;;  %v684_v34 = vpop.f32.mrb[2].mxu1 }
 0x152   : > { %v696_v35 = vmul.f32 %v691_v31, %v611_v33  ;;  %v697_v36 = vmul.f32 %v695_v32, %v684_v34  ;;  %1370 = vrot.lane.b32.xlu0 %v611_v33, %s2211_s24  ;;  %v1797_v37 = vpop.f32.mrb[3].mxu0  ;;  %v1808_v38 = vpop.f32.mrb[3].mxu1 }
 0x154   : > { %1818 = vmatmul.mubr.msk.f32.vlgmr.msra.gmra.mrb[4].mxu0 %vm395_vm1, %v696_v35  ;;  %1829 = vmatmul.mubr.msk.f32.vlgmr.msra.gmra.mrb[4].mxu1 %vm395_vm1, %v697_v36 }
 0x155   : > { %1933 = vmatpush3.bf16.msra.mxu0 %v1920_v20  ;;  %1939 = vmatpush3.bf16.msra.mxu1 %v1920_v20 }
 0x156   : > { %1393 = vrot.lane.b32.xlu0 %v465_v26, %s2212_s25  ;;  %1934 = vmatprep.subr.bf16.mxu0 %v2207_v0 }
 0x157   : > { %1839 = vmatprep.mubr.msk.f32.mxu0 %vm2208_vm0, %v2209_v1  ;;  %1940 = vmatprep.subr.bf16.mxu1 %v2207_v0 }
 0x158   : > { %1850 = vmatprep.mubr.msk.f32.mxu1 %vm2208_vm0, %v2209_v1 }
 0x159   : > { %1936 = vmatpush3.bf16.msra.mxu0 %v1923_v23  ;;  %1942 = vmatpush3.bf16.msra.mxu1 %v1923_v23 }
 0x15a   : > { %1853 = vmatprep.subr.mxu0 %v2209_v1  ;;  %1858 = vmatprep.subr.mxu1 %v2209_v1 }
 0x1bc   : > { %v847_v39 = vpop.permute.xlu0 %846 }
 0x1bd   : > { %v852_v40 = vmul.f32 %v847_v39, %v465_v26 }
 0x1bf   : > { %855 = vrot.lane.b32.xlu1 %v852_v40, %s2211_s24 }
 0x1c0   : > { %v849_v41 = vpop.permute.xlu0 %848 }
 0x1c1   : > { %v853_v42 = vmul.f32 %v849_v41, %v538_v27 }
 0x1c3   : > { %930 = vrot.lane.b32.xlu1 %v853_v42, %s2211_s24 }
 0x1c7   : > { %1372 = vrot.lane.b32.xlu1 %v684_v34, %s2211_s24  ;;  %s2579_s24 = scalar_lea.hbm %s2630_s8, %s1706_s15 }
 0x1cb   : > { %1395 = vrot.lane.b32.xlu1 %v538_v27, %s2212_s25  ;;  %s1554_s25 = scalar_lea.sflag [#allocation4], %s2434_s19 }
 0x227   : > { %v767_v43 = vpop.f32.mrb[4].mxu0  ;;  %v840_v44 = vpop.f32.mrb[4].mxu1 }
 0x228   : > { %v1819_v45 = vpop.f32.mrb[5].mxu0  ;;  %v1830_v46 = vpop.f32.mrb[5].mxu1  ;;  %v1005_v50 = vsel %vm1004_vm3, %v767_v43, -inf  ;;  %v1012_v52 = vsel %vm1004_vm3, %v840_v44, -inf }
 0x229   : > { %v1006_v51 = vrot.slane %v1005_v50, 4  ;;  %v1013_v54 = vrot.slane %v1012_v52, 4 }
 0x22b   : > { %v1007_v53 = vmax.f32 %v1005_v50, %v1006_v51  ;;  %v1014_v56 = vmax.f32 %v1012_v52, %v1013_v54  ;;  %v394_v50 = vld [vmem:[#allocation7 + $0x18] sm:$0xff]  ;;  %v1371_v52 = vpop.permute.xlu0 %1370 }
 0x22d   : > { %v1008_v55 = vrot.slane %v1007_v53, 2  ;;  %v1015_v58 = vrot.slane %v1014_v56, 2 }
 0x22f   : > { %v1009_v57 = vmax.f32 %v1007_v53, %v1008_v55  ;;  %v1016_v59 = vmax.f32 %v1014_v56, %v1015_v58 }
 0x231   : > { %v856_v47 = vpop.permute.xlu1 %855  ;;  %v1010_v60 = vrot.slane %v1009_v57, 1  ;;  %v1017_v62 = vrot.slane %v1016_v59, 1 }
 0x232   : > { %1840 = vmatmul.mubr.msk.f32.vlgmr.msra.gmra.mrb[6].mxu0 %vm395_vm1, %v856_v47  ;;  %v392_v47 = vld [vmem:[#allocation7 + $0x8] sm:$0xff] }
 0x233   : > { %1855 = vmatprep.mubr.msk.f32.mxu0 %vm2208_vm0, %v2209_v1  ;;  %1854 = vmatpush3.msk.msra.mxu0 %vm1075_vm2, %v2531_v49  ;;  %v1011_v61 = vmax.f32 %v1009_v57, %v1010_v60  ;;  %v1018_v6 = vmax.f32 %v1016_v59, %v1017_v62 }
 0x234   : > { %1863 = vmatprep.subr.mxu0 %v2209_v1 }
 0x235   : > { %v931_v48 = vpop.permute.xlu1 %930 }
 0x236   : > { %1851 = vmatmul.mubr.msk.f32.vlgmr.msra.gmra.mrb[6].mxu1 %vm395_vm1, %v931_v48 }
 0x237   : > { %1860 = vmatprep.mubr.msk.f32.mxu1 %vm2208_vm0, %v2209_v1  ;;  %1859 = vmatpush3.msk.msra.mxu1 %vm1075_vm2, %v2531_v49 }
 0x238   : > { %1868 = vmatprep.subr.mxu1 %v2209_v1 }
 0x305   : > { %v925_v63 = vpop.f32.mrb[6].mxu0 }
 0x306   : > { %v1019_v2 = vmax.f32 %v1011_v61, %v925_v63  ;;  %v1841_v3 = vpop.f32.mrb[7].mxu0 }
 0x308   : > { %v1024_v4 = vrot.slane %v1019_v2, %v2508_v30  ;;  %v1035_v5 = vsub.f32 %v925_v63, %v1019_v2 }
 0x309   : > { %v1000_v7 = vpop.f32.mrb[6].mxu1 }
 0x30a   : > { %v1029_v8 = vsub.f32 %v767_v43, %v1024_v4  ;;  %v1020_v9 = vmax.f32 %v1018_v6, %v1000_v7  ;;  %v1852_v10 = vpop.f32.mrb[7].mxu1  ;;  %v1037_v16 = vmul.f32 1.442695, %v1035_v5 }
 0x30b   : > { %v1394_v10 = vpop.permute.xlu0 %1393 }
 0x30c   : > { %v1031_v11 = vmul.f32 1.442695, %v1029_v8  ;;  %v1028_v12 = vrot.slane %v1020_v9, %v2508_v30  ;;  %v1036_v13 = vsub.f32 %v1000_v7, %v1020_v9 }
 0x30e   : > { %2032 = vpow2.f32 %v1031_v11  ;;  %v1030_v14 = vsub.f32 %v840_v44, %v1028_v12  ;;  %v1039_v20 = vmul.f32 1.442695, %v1036_v13 }
 0x310   : > { %v1033_v15 = vmul.f32 1.442695, %v1030_v14 }
 0x312   : > { %2034 = vpow2.f32 %v1033_v15 }
 0x313   : > { %2036 = vpow2.f32 %v1037_v16 }
 0x314   : > { %2038 = vpow2.f32 %v1039_v20  ;;  %v1403_v20 = vld [vmem:[%s2629_s7] sm:$0x1] }
 0x318   : > { %v2033_v17 = vpop.eup %2032 }
 0x319   : > { %v1041_v18 = vsel %vm1004_vm3, %v2033_v17, 0.0 }
 0x31a   : > { %v1042_v19 = vrot.slane %v1041_v18, 4 }
 0x31c   : > { %v2035_v21 = vpop.eup %2034  ;;  %v1043_v22 = vadd.f32 %v1042_v19, %v1041_v18 }
 0x31d   : > { %v1048_v23 = vsel %vm1004_vm3, %v2035_v21, 0.0  ;;  %v2037_v33 = vpop.eup %2036 }
 0x31e   : > { %v1044_v24 = vrot.slane %v1043_v22, 2  ;;  %v1049_v25 = vrot.slane %v1048_v23, 4  ;;  %v2039_v37 = vpop.eup %2038 }
 0x320   : > { %v1045_v26 = vadd.f32 %v1044_v24, %v1043_v22  ;;  %v1050_v27 = vadd.f32 %v1049_v25, %v1048_v23 }
 0x322   : > { %v1046_v28 = vrot.slane %v1045_v26, 1  ;;  %v1051_v29 = vrot.slane %v1050_v27, 2 }
 0x324   : > { %v1047_v31 = vadd.f32 %v1046_v28, %v1045_v26  ;;  %v1052_v32 = vadd.f32 %v1051_v29, %v1050_v27 }
 0x326   : > { %v1055_v34 = vadd.f32 %v2037_v33, %v1047_v31  ;;  %v1053_v35 = vrot.slane %v1052_v32, 1 }
 0x328   : > { %2040 = vrcp.f32 %v1055_v34  ;;  %v1054_v36 = vadd.f32 %v1053_v35, %v1052_v32 }
 0x32a   : > { %v1056_v38 = vadd.f32 %v2039_v37, %v1054_v36 }
 0x32c   : > { %2042 = vrcp.f32 %v1056_v38 }
 0x332   : > { %v2041_v39 = vpop.eup %2040 }
 0x333   : > { %v1062_v40 = vrot.slane %v2041_v39, %v2508_v30  ;;  %v1069_v41 = vmul.f32 %v2041_v39, %v2037_v33 }
 0x335   : > { %v1067_v42 = vmul.f32 %v2033_v17, %v1062_v40 }
 0x336   : > { %v2043_v43 = vpop.eup %2042 }
 0x337   : > { %1856 = vmatmul.mubr.msk.f32.vlgmr.msra.gmra.mrb[8].mxu0 %vm1071_vm4, %v1067_v42  ;;  %v1066_v44 = vrot.slane %v2043_v43, %v2508_v30  ;;  %v1070_v45 = vmul.f32 %v2043_v43, %v2039_v37  ;;  %v391_v30 = vld [vmem:[#allocation7] sm:$0xff] }
 0x338   : > { %1864 = vmatpush3.msk.msra.mxu0 %vm1075_vm2, %v2531_v49  ;;  %1865 = vmatprep.mubr.msk.f32.mxu0 %vm2208_vm0, %v2209_v1  ;;  %v1944_v48 = vpack.c.bf16 %v392_v47, %v391_v30 }
 0x339   : > { %v1068_v46 = vmul.f32 %v2035_v21, %v1066_v44  ;;  %1943 = vmatprep.subr.bf16.mxu0 %v2207_v0 }
 0x33b   : > { %1861 = vmatmul.mubr.msk.f32.vlgmr.msra.gmra.mrb[8].mxu1 %vm1071_vm4, %v1068_v46  ;;  %1866 = vmatmul.mubr.msk.f32.vlgmr.msra.gmra.mrb[10].mxu0 %vm1071_vm4, %v1069_v41 }
 0x33c   : > { %1869 = vmatpush3.msk.msra.mxu1 %vm1075_vm2, %v2531_v49  ;;  %1870 = vmatprep.mubr.msk.f32.mxu1 %vm2208_vm0, %v2209_v1  ;;  %v393_v49 = vld [vmem:[#allocation7 + $0x10] sm:$0xff] }
 0x33d   : > { %1949 = vmatprep.subr.bf16.mxu1 %v2207_v0  ;;  %1881 = vmatprep.mubr.msk.f32.mxu0 %vm2208_vm0, %v2209_v1  ;;  %v1947_v51 = vpack.c.bf16 %v394_v50, %v393_v49 }
 0x33e   : > { %1945 = vmatpush3.bf16.msra.mxu0 %v1944_v48 }
 0x33f   : > { %1871 = vmatmul.mubr.msk.f32.vlgmr.msra.gmra.mrb[10].mxu1 %vm1071_vm4, %v1070_v45  ;;  %1946 = vmatprep.subr.bf16.mxu0 %v2207_v0 }
 0x340   : > { %1892 = vmatprep.mubr.msk.f32.mxu1 %vm2208_vm0, %v2209_v1  ;;  %1951 = vmatpush3.bf16.msra.mxu1 %v1944_v48  ;;  %v1373_v1 = vpop.permute.xlu1 %1372 }
 0x341   : > { %1952 = vmatprep.subr.bf16.mxu1 %v2207_v0 }
 0x342   : > { %1948 = vmatpush3.bf16.msra.mxu0 %v1947_v51 }
 0x344   : > { %1954 = vmatpush3.bf16.msra.mxu1 %v1947_v51  ;;  %v1396_v16 = vpop.permute.xlu1 %1395 }
 0x40a   : > { %v1145_v53 = vpop.f32.mrb[8].mxu0 }
 0x40b   : > { %v1376_v54 = vmul.f32 %v1371_v52, %v1145_v53  ;;  %v1857_v55 = vpop.f32.mrb[9].mxu0 }
 0x40d   : > { %v1379_v56 = vsel %vm1378_vm5, %v1376_v54, 0.0 }
 0x40e   : > { %v1380_v57 = vrot.slane %v1379_v56, 4  ;;  %v1218_v58 = vpop.f32.mrb[8].mxu1  ;;  %v1291_v59 = vpop.f32.mrb[10].mxu0 }
 0x40f   : > { %v1377_v60 = vmul.f32 %v1373_v1, %v1218_v58  ;;  %v1862_v61 = vpop.f32.mrb[9].mxu1  ;;  %v1867_v62 = vpop.f32.mrb[11].mxu0  ;;  %v1399_v13 = vmul.f32 %v1394_v10, %v1291_v59 }
 0x410   : > { %v1381_v63 = vadd.f32 %v1380_v57, %v1379_v56 }
 0x411   : > { %v1386_v2 = vsel %vm1378_vm5, %v1377_v60, 0.0 }
 0x412   : > { %v1382_v3 = vrot.slane %v1381_v63, 2  ;;  %v1387_v0 = vrot.slane %v1386_v2, 4  ;;  %v1364_v4 = vpop.f32.mrb[10].mxu1 }
 0x413   : > { %v1872_v5 = vpop.f32.mrb[11].mxu1  ;;  %v1400_v18 = vmul.f32 %v1396_v16, %v1364_v4 }
 0x414   : > { %v1383_v6 = vadd.f32 %v1382_v3, %v1381_v63  ;;  %v1388_v7 = vadd.f32 %v1387_v0, %v1386_v2 }
 0x416   : > { %v1389_v8 = vrot.slane %v1388_v7, 2  ;;  %v1384_v9 = vrot.slane %v1383_v6, 1 }
 0x418   : > { %v1390_v11 = vadd.f32 %v1389_v8, %v1388_v7  ;;  %v1385_v12 = vadd.f32 %v1384_v9, %v1383_v6 }
 0x41a   : > { %v1401_v14 = vadd.f32 %v1399_v13, %v1385_v12  ;;  %v1391_v15 = vrot.slane %v1390_v11, 1 }
 0x41c   : > { %v1392_v17 = vadd.f32 %v1391_v15, %v1390_v11  ;;  %1882 = vmatmul.mubr.msk.f32.vlgmr.msra.gmra.mrb[12].mxu0 %vm395_vm1, %v1401_v14 }
 0x41e   : > { %v1402_v19 = vadd.f32 %v1400_v18, %v1392_v17 }
 0x420   : > { %1893 = vmatmul.mubr.msk.f32.vlgmr.msra.gmra.mrb[12].mxu1 %vm395_vm1, %v1402_v19 }
 0x4ef   : > { %v1473_v21 = vpop.f32.mrb[12].mxu0 }
 0x4f0   : > { %v1474_v22 = vadd.f32 %v1473_v21, %v1403_v20  ;;  %v1883_v23 = vpop.f32.mrb[13].mxu0 }
 0x4f2   : > { %1551 = vst.msk [vmem:[%s366_s21] sm:$0x1] %vm1550_vm6, %v1474_v22 }
 0x4f3   : > { %v1546_v24 = vpop.f32.mrb[12].mxu1 }
 0x4f4   : > { %v1547_v25 = vadd.f32 %v1546_v24, %v1403_v20  ;;  %v1894_v26 = vpop.f32.mrb[13].mxu1 }
 0x4f6   : > { %1552 = vst.msk [vmem:[%s366_s21 + $0x1] sm:$0x1] %vm1550_vm6, %v1547_v25 }
 0x4f7   : > { %2143 = shalt.err (!%p2140_p9)
}
 0x4f8   : > { %s2144_s17 = scalar_lea.hbm %s2579_s24, 32  ;;  %s2148_s15 = scalar_lea.hbm %s2630_s8, 96 }
 0x4f9   : > { %p2145_p12 = scmp.ne.s32.totalorder %s2579_s24, %s2144_s17  ;;  %p2149_p10 = scmp.lt.u32.totalorder %s2579_s24, %s2630_s8 }
 0x4fa   : > { %p2150_p1 = scmp.lt.u32.totalorder %s2148_s15, %s2144_s17  ;;  %p2152_p4 = scmp.lt.u32.totalorder %s2144_s17, %s2579_s24 }
 0x4fb   : > { %p2146_p0 = pnand %p2145_p12, %p2379_p6 }
 0x4fc   : > { %p2151_p2 = por %p2150_p1, %p2149_p10 }
 0x4fd   : > { %p2147_p5 = pneg %p2146_p0 }
 0x4fe   : > { %p2153_p8 = por %p2152_p4, %p2151_p2 }
 0x500   : > { %p2154_p11 = pnand %p2153_p8, %p2147_p5 }
 0x502   : > { %2157 = shalt.err (!%p2154_p11)
}
 0x503   : > { %s2214_s11 = smov 16   ;;  %s2215_s9 = smov 1  }
 0x504   : > { %1965 = dma.vmem_to_hbm [thread:$0]  (%p2379_p6), %s2574_s20, 32, %s2579_s24, %s1554_s25, %s2214_s11, %s2214_s11, %s2215_s9  }
 0x505 PF: > { %p1987_p13 = scmp.ge.s32.totalorder %s2200_s30, 2  ;;  %s1582_s13 = sand.u32 1, %s2188_s27  }
 0x506   : > { %p2649_p3 = scmp.ne.s32.totalorder %s2637_s12, 0  ;;  %s1583_s10 = scalar_lea.sflag [#allocation4], %s1582_s13 }
 0x508   : > { %p1979_p7 = pnand %p1987_p13, %p2649_p3 }
 0x50a   : > { %2183 = dma.done.wait (!%p1979_p7), %s1583_s10, 32  }
 0x50b   : > { %2185 = vsyncadd (!%p1979_p7), %s1583_s10, 4294967264  ;;  %p22_p9 = scmp.ge.s32.totalorder %s2369_s16, 5   ;;  %s2650_s27 = smov %s2192_s28 }
 0x50c   : > { %s2651_s28 = smov %s2196_s29  ;;  %s2652_s29 = smov %s2385_s23 }
 0x50d   : > { %s2653_s30 = smov %s2369_s16  ;;  %24 = sbr.rel (!%p22_p9) target bundleno = 6 (0x6), region = 108 }
 0x514   :  { %1588 = vsyncpa [#allocation3], 1 }
 0x515   :  { %1590 = vsyncpa [#allocation3 + $0x1], 1 }
 0x516   :  { %1591 = vsyncpa [#allocation6], 1 }
 0x517   :  { %1592 = vsyncpa [#allocation4], 1 }
 0x518   :  { %1594 = vsyncpa [#allocation4 + $0x1], 1 }

</bundles_post_ra>
